<compile_context>
chip_gen: v7x
topology: tpu7x:2x2x1
jax: 0.10.0
libtpu: 0.0.40
codegen_flags: <defaults>
</compile_context>

<pallas_src>
import functools

import jax
import jax.numpy as jnp
from jax.experimental import pallas as pl
from jax.experimental.pallas import tpu as pltpu


def _round_up(x, m):
    return (x + m - 1) // m * m


def _vmem_capacity_bytes():
    # Trace-time hardware query; fall back to the smallest per-TC VMEM (v7x,
    # 64 MiB) so the block budget is safe on every generation.
    try:
        return int(pltpu.get_tpu_info().vmem_capacity_bytes)
    except Exception:
        return 64 * 2 ** 20


def _det_head_kernel(hs_ref, q_ref, wcb_ref, bcb_ref, w2_ref, b2_ref, mask_ref,
                     logits_ref, box_ref, attn_ref, *, c1_pad, use_mask):
    Bb, P_pad, H_pad = hs_ref.shape
    Q_pad = q_ref.shape[0]
    box_pad = w2_ref.shape[1]

    q = q_ref[...]                                            # bf16 [Q_pad, H_pad]
    hs = hs_ref[...]                                          # bf16 [Bb, P_pad, H_pad]
    hs_flat = hs.reshape(Bb * P_pad, H_pad)                   # leading-dim collapse (layout-free)

    # One MXU launch for every batch element in this block:
    #   scores_all[q, b*P_pad + p] = sum_h q[q, h] * hs[b, p, h]   (A . B^T form)
    scores_all = jax.lax.dot_general(
        q, hs_flat, (((1,), (1,)), ((), ())),
        preferred_element_type=jnp.float32)                   # f32 [Q_pad, Bb*P_pad]

    if use_mask:
        bias = mask_ref[...]                                  # f32 [1, P_pad], 0 / -1e30

    feats = []
    for b in range(Bb):                                       # static, small Bb
        scores = scores_all[:, b * P_pad:(b + 1) * P_pad]     # lane-aligned static view
        if use_mask:
            scores = scores + bias                            # single VPU add
        m = jnp.max(scores, axis=-1, keepdims=True)
        e = jnp.exp(scores - m)
        s = jnp.sum(e, axis=-1, keepdims=True)
        # approx reciprocal (EUP) on the softmax denominator: documented choice,
        # error is far below the bf16 operand noise of the scores matmul.
        attn = e * pl.reciprocal(s, approx=True)              # f32 [Q_pad, P_pad]
        attn_ref[b] = attn                                    # f32 writeback (module contract)
        feats.append(jnp.dot(attn.astype(jnp.bfloat16), hs[b],
                             preferred_element_type=jnp.float32
                             ).astype(jnp.bfloat16))          # bf16 [Q_pad, H_pad]

    feat = feats[0] if Bb == 1 else jnp.concatenate(feats, axis=0)   # bf16 [Bb*Q_pad, H_pad]

    # Fused class head + bbox layer-1 (bf16 operands, f32 accumulation).
    fused = jnp.dot(feat, wcb_ref[...],
                    preferred_element_type=jnp.float32) + bcb_ref[...]
    logits = fused[:, :c1_pad]                                # [Bb*Q_pad, C1_pad]
    h1 = jnp.maximum(fused[:, c1_pad:], 0.0)                  # [Bb*Q_pad, H_pad]

    h2 = jnp.dot(h1.astype(jnp.bfloat16), w2_ref[...],
                 preferred_element_type=jnp.float32) + b2_ref[...]
    boxes = 1.0 / (1.0 + jnp.exp(-h2))                        # exact sigmoid (tiny, user-visible)

    logits_ref[...] = logits.reshape(Bb, Q_pad, c1_pad)
    box_ref[...] = boxes.reshape(Bb, Q_pad, box_pad)


@jax.jit
def detection_head_forward(hidden_states, query, wc, bc, w1, b1, w2, b2):
    B, P, H = hidden_states.shape
    Q = query.shape[0]
    C1 = wc.shape[1]

    LANE, SUB = 128, 8
    H_pad = _round_up(H, LANE)
    P_pad = _round_up(P, LANE)      # lanes of attn output; sublanes of hs block
    Q_pad = _round_up(Q, SUB)
    C1_pad = _round_up(C1, LANE)
    BOX_pad = _round_up(4, LANE)
    WF = C1_pad + H_pad             # fused head output width

    vmem_cap = _vmem_capacity_bytes()

    # ---- generation / VMEM-aware choice of Bb (batch elements per grid step) ----
    weight_bytes = (Q_pad * H_pad * 2 + H_pad * WF * 2 + WF * 4
                    + H_pad * BOX_pad * 2 + BOX_pad * 4 + P_pad * 4)  # single-buffered

    def step_bytes(bb):
        blk = bb * (P_pad * H_pad * 2
                    + Q_pad * (P_pad * 4 + C1_pad * 4 + BOX_pad * 4))
        inter = bb * Q_pad * (3 * P_pad * 4 + H_pad * 2 + 2 * WF * 4 + 2 * BOX_pad * 4)
        return 2 * blk + inter       # double-buffered blocks + live f32 temps

    bb_cap = 8 if vmem_cap >= 100 * 2 ** 20 else 4   # bigger packing on 128 MiB parts
    Bb = 1
    for cand in (2, 4, 8):
        if cand <= min(B, bb_cap) and weight_bytes + step_bytes(cand) <= int(0.45 * vmem_cap):
            Bb = cand
    if B >= 2:
        Bb = min(Bb, -(-B // 2))     # >= 2 grid steps so both v7x TCs get work
    B_pad = _round_up(B, Bb)
    grid = (B_pad // Bb,)

    # ---- wrapper-side layout plumbing (zero-padded, bf16 MXU operands) ----
    hs_p = jnp.pad(hidden_states,
                   ((0, B_pad - B), (0, P_pad - P), (0, H_pad - H))).astype(jnp.bfloat16)
    q_p = jnp.pad(query, ((0, Q_pad - Q), (0, H_pad - H))).astype(jnp.bfloat16)
    wc_p = jnp.pad(wc, ((0, H_pad - H), (0, C1_pad - C1)))
    w1_p = jnp.pad(w1, ((0, H_pad - H), (0, H_pad - H)))
    wcb = jnp.concatenate([wc_p, w1_p], axis=1).astype(jnp.bfloat16)     # [H_pad, WF]
    bc_p = jnp.pad(bc, ((0, 0), (0, C1_pad - C1)))
    b1_p = jnp.pad(b1, ((0, 0), (0, H_pad - H)))
    bcb = jnp.concatenate([bc_p, b1_p], axis=1).astype(jnp.float32)      # [1, WF]
    w2_p = jnp.pad(w2, ((0, H_pad - H), (0, BOX_pad - 4))).astype(jnp.bfloat16)
    b2_p = jnp.pad(b2, ((0, 0), (0, BOX_pad - 4))).astype(jnp.float32)

    use_mask = P < P_pad
    mask_bias = jnp.where(jnp.arange(P_pad) < P, 0.0, -1e30
                          ).astype(jnp.float32).reshape(1, P_pad)

    def _const_spec(shape):
        n = len(shape)

        def idx(g):
            return (0,) * n

        try:
            # Grid-invariant operand: fetched once; single-buffer it to halve
            # its VMEM reservation (most valuable inside v7x's 64 MiB).
            return pl.BlockSpec(shape, idx, pipeline_mode=pl.Buffered(1))
        except Exception:
            return pl.BlockSpec(shape, idx)

    in_specs = [
        pl.BlockSpec((Bb, P_pad, H_pad), lambda g: (g, 0, 0)),   # hidden_states
        _const_spec((Q_pad, H_pad)),                             # queries
        _const_spec((H_pad, WF)),                                # fused [Wc | W1]
        _const_spec((1, WF)),                                    # fused [bc | b1]
        _const_spec((H_pad, BOX_pad)),                           # W2 (padded)
        _const_spec((1, BOX_pad)),                               # b2 (padded)
        _const_spec((1, P_pad)),                                 # additive softmax mask bias
    ]
    out_specs = [
        pl.BlockSpec((Bb, Q_pad, C1_pad), lambda g: (g, 0, 0)),  # class logits
        pl.BlockSpec((Bb, Q_pad, BOX_pad), lambda g: (g, 0, 0)), # boxes
        pl.BlockSpec((Bb, Q_pad, P_pad), lambda g: (g, 0, 0)),   # attention (f32)
    ]
    out_shape = [
        jax.ShapeDtypeStruct((B_pad, Q_pad, C1_pad), jnp.float32),
        jax.ShapeDtypeStruct((B_pad, Q_pad, BOX_pad), jnp.float32),
        jax.ShapeDtypeStruct((B_pad, Q_pad, P_pad), jnp.float32),
    ]

    # VMEM request: actual block/intermediate need, capped by chip capacity.
    vmem_limit = int(min(int(0.85 * vmem_cap),
                         max(32 * 2 ** 20,
                             weight_bytes + step_bytes(Bb) + (1 << 20))))

    # Advisory cost so XLA schedules the surrounding pad/cast/slice passes well.
    flops = (4 * B_pad * Q_pad * P_pad * H_pad
             + 2 * B_pad * Q_pad * H_pad * (WF + BOX_pad))
    transcendentals = B_pad * Q_pad * (P_pad + BOX_pad)
    bytes_accessed = (hs_p.size * 2 + q_p.size * 2 + wcb.size * 2 + bcb.size * 4
                      + w2_p.size * 2 + b2_p.size * 4 + mask_bias.size * 4
                      + B_pad * Q_pad * (C1_pad + BOX_pad + P_pad) * 4)
    cost = pl.CostEstimate(flops=int(flops),
                           transcendentals=int(transcendentals),
                           bytes_accessed=int(bytes_accessed))

    kernel = functools.partial(_det_head_kernel, c1_pad=C1_pad, use_mask=use_mask)
    logits_p, boxes_p, attn_p = pl.pallas_call(
        kernel,
        out_shape=out_shape,
        grid=grid,
        in_specs=in_specs,
        out_specs=out_specs,
        compiler_params=pltpu.CompilerParams(
            dimension_semantics=("parallel",),
            vmem_limit_bytes=vmem_limit),
        cost_estimate=cost,
    )(hs_p, q_p, wcb, bcb, w2_p, b2_p, mask_bias)

    class_logits = logits_p[:B, :Q, :C1]
    box_coords = boxes_p[:B, :Q, :4]
    attention_weights = attn_p[:B, :Q, :P]
    return class_logits, box_coords, attention_weights


def _reference_forward(hidden_states, query, wc, bc, w1, b1, w2, b2):
    """Pure-JAX f32 reference matching the PyTorch forward."""
    B = hidden_states.shape[0]
    queries = jnp.broadcast_to(query[None], (B,) + query.shape)
    scores = jnp.einsum("bqh,bph->bqp", queries, hidden_states)
    attn = jax.nn.softmax(scores, axis=-1)
    feat = jnp.einsum("bqp,bph->bqh", attn, hidden_states)
    logits = feat @ wc + bc
    boxes = jax.nn.sigmoid(jnp.maximum(feat @ w1 + b1, 0.0) @ w2 + b2)
    return logits, boxes, attn


def init_params(key, hidden_size, num_classes, num_queries):
    """Deterministic synthetic parameter init (shapes match the nn.Module)."""
    ks = jax.random.split(key, 6)
    C1 = num_classes + 1
    query = jax.random.normal(ks[0], (num_queries, hidden_size), jnp.float32)      # Embedding weight
    wc = 0.05 * jax.random.normal(ks[1], (hidden_size, C1), jnp.float32)           # class_embed (in,out)
    bc = 0.01 * jax.random.normal(ks[2], (1, C1), jnp.float32)
    w1 = 0.05 * jax.random.normal(ks[3], (hidden_size, hidden_size), jnp.float32)  # bbox_embed[0]
    b1 = 0.01 * jax.random.normal(ks[4], (1, hidden_size), jnp.float32)
    w2 = 0.05 * jax.random.normal(ks[5], (hidden_size, 4), jnp.float32)            # bbox_embed[2]
    b2 = jnp.zeros((1, 4), jnp.float32)
    return query, wc, bc, w1, b1, w2, b2


if __name__ == "__main__":
    B, P, H = 2, 8, 32           # batch, num_patches, hidden_size
    num_classes, Q = 7, 16       # class dim = 8; num_queries = 16 (small test)

    key = jax.random.PRNGKey(0)
    k_x, k_p = jax.random.split(key)
    hidden_states = jax.random.normal(k_x, (B, P, H), jnp.float32)
    params = init_params(k_p, H, num_classes, Q)

    logits, boxes, attn = detection_head_forward(hidden_states, *params)
    jax.block_until_ready((logits, boxes, attn))

    assert logits.shape == (B, Q, num_classes + 1)
    assert boxes.shape == (B, Q, 4)
    assert attn.shape == (B, Q, P)

    # Sanity check against pure-JAX f32 reference (bf16 matmul operands -> loose tol).
    ref_logits, ref_boxes, ref_attn = _reference_forward(hidden_states, *params)
    assert jnp.allclose(logits, ref_logits, rtol=6e-2, atol=6e-2)
    assert jnp.allclose(boxes, ref_boxes, rtol=6e-2, atol=6e-2)
    assert jnp.allclose(attn, ref_attn, rtol=6e-2, atol=6e-2)

    print("KERNEL_OK")
</pallas_src>

<mosaic_0001>
module attributes {stable_mosaic.version = 11 : i64} {
  func.func @_det_head_kernel(%arg0: i32, %arg1: memref<1x128x128xbf16, #tpu.memory_space<vmem>>, %arg2: memref<16x128xbf16, #tpu.memory_space<vmem>>, %arg3: memref<128x256xbf16, #tpu.memory_space<vmem>>, %arg4: memref<1x256xf32, #tpu.memory_space<vmem>>, %arg5: memref<128x128xbf16, #tpu.memory_space<vmem>>, %arg6: memref<1x128xf32, #tpu.memory_space<vmem>>, %arg7: memref<1x128xf32, #tpu.memory_space<vmem>>, %arg8: memref<1x16x128xf32, #tpu.memory_space<vmem>>, %arg9: memref<1x16x128xf32, #tpu.memory_space<vmem>>, %arg10: memref<1x16x128xf32, #tpu.memory_space<vmem>>) attributes {dimension_semantics = [#tpu.dimension_semantics<parallel>], iteration_bounds = array<i64: 2>, scalar_prefetch = 0 : i64, scratch_operands = 0 : i64, tpu.core_type = #tpu.core_type<tc>, window_params = [{transform_indices = @transform_0, window_bounds = array<i64: 1, 128, 128>}, {pipeline_mode = #tpu.pipeline_mode<synchronous>, transform_indices = @transform_1, window_bounds = array<i64: 16, 128>}, {pipeline_mode = #tpu.pipeline_mode<synchronous>, transform_indices = @transform_2, window_bounds = array<i64: 128, 256>}, {pipeline_mode = #tpu.pipeline_mode<synchronous>, transform_indices = @transform_3, window_bounds = array<i64: 1, 256>}, {pipeline_mode = #tpu.pipeline_mode<synchronous>, transform_indices = @transform_4, window_bounds = array<i64: 128, 128>}, {pipeline_mode = #tpu.pipeline_mode<synchronous>, transform_indices = @transform_5, window_bounds = array<i64: 1, 128>}, {pipeline_mode = #tpu.pipeline_mode<synchronous>, transform_indices = @transform_6, window_bounds = array<i64: 1, 128>}, {transform_indices = @transform_7, window_bounds = array<i64: 1, 16, 128>}, {transform_indices = @transform_8, window_bounds = array<i64: 1, 16, 128>}, {transform_indices = @transform_9, window_bounds = array<i64: 1, 16, 128>}]} {
    %c0 = arith.constant 0 : index
    %c0_0 = arith.constant 0 : index
    %0 = vector.load %arg2[%c0, %c0_0] : memref<16x128xbf16, #tpu.memory_space<vmem>>, vector<16x128xbf16>
    %c0_1 = arith.constant 0 : index
    %c0_2 = arith.constant 0 : index
    %c0_3 = arith.constant 0 : index
    %1 = vector.load %arg1[%c0_1, %c0_2, %c0_3] : memref<1x128x128xbf16, #tpu.memory_space<vmem>>, vector<1x128x128xbf16>
    %2 = vector.shape_cast %1 : vector<1x128x128xbf16> to vector<128x128xbf16>
    %cst = arith.constant dense<0.000000e+00> : vector<16x128xf32>
    %3 = tpu.matmul %0, %2, %cst {dimension_numbers = #tpu.dot_dimension_numbers<[1], [1], [0], [0], [0, 0, 1, 0], [], []>} : vector<16x128xbf16>, vector<128x128xbf16>, vector<16x128xf32> -> vector<16x128xf32>
    %c0_4 = arith.constant 0 : index
    %c0_5 = arith.constant 0 : index
    %4 = vector.load %arg7[%c0_4, %c0_5] : memref<1x128xf32, #tpu.memory_space<vmem>>, vector<1x128xf32>
    %5 = vector.broadcast %4 : vector<1x128xf32> to vector<16x128xf32>
    %6 = arith.addf %3, %5 : vector<16x128xf32>
    %cst_6 = arith.constant dense<0xFF800000> : vector<16xf32>
    %7 = vector.multi_reduction <maximumf>, %6, %cst_6 [1] : vector<16x128xf32> to vector<16xf32>
    %8 = vector.shape_cast %7 : vector<16xf32> to vector<16x1xf32>
    %9 = vector.broadcast %8 : vector<16x1xf32> to vector<16x128xf32>
    %10 = arith.subf %6, %9 : vector<16x128xf32>
    %11 = math.exp %10 : vector<16x128xf32>
    %cst_7 = arith.constant dense<0.000000e+00> : vector<16xf32>
    %12 = vector.multi_reduction <add>, %11, %cst_7 [1] : vector<16x128xf32> to vector<16xf32>
    %13 = vector.shape_cast %12 : vector<16xf32> to vector<16x1xf32>
    %14 = tpu.reciprocal %13 {approx = true} : vector<16x1xf32> -> vector<16x1xf32>
    %15 = vector.broadcast %14 : vector<16x1xf32> to vector<16x128xf32>
    %16 = arith.mulf %11, %15 : vector<16x128xf32>
    %c0_8 = arith.constant 0 : index
    %c0_9 = arith.constant 0 : index
    %c0_10 = arith.constant 0 : index
    %17 = vector.load %arg10[%c0_8, %c0_9, %c0_10] : memref<1x16x128xf32, #tpu.memory_space<vmem>>, vector<1x16x128xf32>
    %18 = vector.shape_cast %17 : vector<1x16x128xf32> to vector<16x128xf32>
    %19 = vector.shape_cast %16 : vector<16x128xf32> to vector<1x16x128xf32>
    tpu.vector_store %arg10[%c0_8, %c0_9, %c0_10], %19 {strides = array<i32>} : memref<1x16x128xf32, #tpu.memory_space<vmem>>, vector<1x16x128xf32>,
    %20 = arith.truncf %16 : vector<16x128xf32> to vector<16x128xbf16>
    %21 = vector.shape_cast %1 : vector<1x128x128xbf16> to vector<128x128xbf16>
    %cst_11 = arith.constant dense<0.000000e+00> : vector<16x128xf32>
    %22 = tpu.matmul %20, %21, %cst_11 {dimension_numbers = #tpu.dot_dimension_numbers<[1], [0], [0], [1], [0, 0, 1, 1], [], []>} : vector<16x128xbf16>, vector<128x128xbf16>, vector<16x128xf32> -> vector<16x128xf32>
    %23 = arith.truncf %22 : vector<16x128xf32> to vector<16x128xbf16>
    %c0_12 = arith.constant 0 : index
    %c0_13 = arith.constant 0 : index
    %24 = vector.load %arg3[%c0_12, %c0_13] : memref<128x256xbf16, #tpu.memory_space<vmem>>, vector<128x256xbf16>
    %cst_14 = arith.constant dense<0.000000e+00> : vector<16x256xf32>
    %25 = tpu.matmul %23, %24, %cst_14 {dimension_numbers = #tpu.dot_dimension_numbers<[1], [0], [0], [1], [0, 0, 1, 1], [], []>} : vector<16x128xbf16>, vector<128x256xbf16>, vector<16x256xf32> -> vector<16x256xf32>
    %c0_15 = arith.constant 0 : index
    %c0_16 = arith.constant 0 : index
    %26 = vector.load %arg4[%c0_15, %c0_16] : memref<1x256xf32, #tpu.memory_space<vmem>>, vector<1x256xf32>
    %27 = vector.broadcast %26 : vector<1x256xf32> to vector<16x256xf32>
    %28 = arith.addf %25, %27 : vector<16x256xf32>
    %29 = vector.extract_strided_slice %28 {offsets = [0, 0], sizes = [16, 128], strides = [1, 1]} : vector<16x256xf32> to vector<16x128xf32>
    %30 = vector.extract_strided_slice %28 {offsets = [0, 128], sizes = [16, 128], strides = [1, 1]} : vector<16x256xf32> to vector<16x128xf32>
    %cst_17 = arith.constant 0.000000e+00 : f32
    %31 = vector.broadcast %cst_17 : f32 to vector<16x128xf32>
    %32 = arith.maximumf %30, %31 : vector<16x128xf32>
    %33 = arith.truncf %32 : vector<16x128xf32> to vector<16x128xbf16>
    %c0_18 = arith.constant 0 : index
    %c0_19 = arith.constant 0 : index
    %34 = vector.load %arg5[%c0_18, %c0_19] : memref<128x128xbf16, #tpu.memory_space<vmem>>, vector<128x128xbf16>
    %cst_20 = arith.constant dense<0.000000e+00> : vector<16x128xf32>
    %35 = tpu.matmul %33, %34, %cst_20 {dimension_numbers = #tpu.dot_dimension_numbers<[1], [0], [0], [1], [0, 0, 1, 1], [], []>} : vector<16x128xbf16>, vector<128x128xbf16>, vector<16x128xf32> -> vector<16x128xf32>
    %c0_21 = arith.constant 0 : index
    %c0_22 = arith.constant 0 : index
    %36 = vector.load %arg6[%c0_21, %c0_22] : memref<1x128xf32, #tpu.memory_space<vmem>>, vector<1x128xf32>
    %37 = vector.broadcast %36 : vector<1x128xf32> to vector<16x128xf32>
    %38 = arith.addf %35, %37 : vector<16x128xf32>
    %cst_23 = arith.constant 0.000000e+00 : f32
    %39 = vector.broadcast %cst_23 : f32 to vector<16x128xf32>
    %40 = arith.subf %39, %38 : vector<16x128xf32>
    %41 = math.exp %40 : vector<16x128xf32>
    %cst_24 = arith.constant 1.000000e+00 : f32
    %42 = vector.broadcast %cst_24 : f32 to vector<16x128xf32>
    %43 = arith.addf %42, %41 : vector<16x128xf32>
    %cst_25 = arith.constant 1.000000e+00 : f32
    %44 = vector.broadcast %cst_25 : f32 to vector<16x128xf32>
    %45 = arith.divf %44, %43 : vector<16x128xf32>
    %46 = vector.shape_cast %29 : vector<16x128xf32> to vector<1x16x128xf32>
    %c0_26 = arith.constant 0 : index
    %c0_27 = arith.constant 0 : index
    %c0_28 = arith.constant 0 : index
    %47 = vector.load %arg8[%c0_26, %c0_27, %c0_28] : memref<1x16x128xf32, #tpu.memory_space<vmem>>, vector<1x16x128xf32>
    tpu.vector_store %arg8[%c0_26, %c0_27, %c0_28], %46 {strides = array<i32>} : memref<1x16x128xf32, #tpu.memory_space<vmem>>, vector<1x16x128xf32>,
    %48 = vector.shape_cast %45 : vector<16x128xf32> to vector<1x16x128xf32>
    %c0_29 = arith.constant 0 : index
    %c0_30 = arith.constant 0 : index
    %c0_31 = arith.constant 0 : index
    %49 = vector.load %arg9[%c0_29, %c0_30, %c0_31] : memref<1x16x128xf32, #tpu.memory_space<vmem>>, vector<1x16x128xf32>
    tpu.vector_store %arg9[%c0_29, %c0_30, %c0_31], %48 {strides = array<i32>} : memref<1x16x128xf32, #tpu.memory_space<vmem>>, vector<1x16x128xf32>,
    return
  }
  func.func @transform_0(%arg0: i32) -> (i32, i32, i32) {
    %c0_i32 = arith.constant 0 : i32
    %c0_i32_0 = arith.constant 0 : i32
    %c0_i32_1 = arith.constant 0 : i32
    return %arg0, %c0_i32, %c0_i32_0 : i32, i32, i32
  }
  func.func @transform_1(%arg0: i32) -> (i32, i32) {
    %c0_i32 = arith.constant 0 : i32
    %c0_i32_0 = arith.constant 0 : i32
    %c0_i32_1 = arith.constant 0 : i32
    return %c0_i32, %c0_i32_0 : i32, i32
  }
  func.func @transform_2(%arg0: i32) -> (i32, i32) {
    %c0_i32 = arith.constant 0 : i32
    %c0_i32_0 = arith.constant 0 : i32
    %c0_i32_1 = arith.constant 0 : i32
    return %c0_i32, %c0_i32_0 : i32, i32
  }
  func.func @transform_3(%arg0: i32) -> (i32, i32) {
    %c0_i32 = arith.constant 0 : i32
    %c0_i32_0 = arith.constant 0 : i32
    %c0_i32_1 = arith.constant 0 : i32
    return %c0_i32, %c0_i32_0 : i32, i32
  }
  func.func @transform_4(%arg0: i32) -> (i32, i32) {
    %c0_i32 = arith.constant 0 : i32
    %c0_i32_0 = arith.constant 0 : i32
    %c0_i32_1 = arith.constant 0 : i32
    return %c0_i32, %c0_i32_0 : i32, i32
  }
  func.func @transform_5(%arg0: i32) -> (i32, i32) {
    %c0_i32 = arith.constant 0 : i32
    %c0_i32_0 = arith.constant 0 : i32
    %c0_i32_1 = arith.constant 0 : i32
    return %c0_i32, %c0_i32_0 : i32, i32
  }
  func.func @transform_6(%arg0: i32) -> (i32, i32) {
    %c0_i32 = arith.constant 0 : i32
    %c0_i32_0 = arith.constant 0 : i32
    %c0_i32_1 = arith.constant 0 : i32
    return %c0_i32, %c0_i32_0 : i32, i32
  }
  func.func @transform_7(%arg0: i32) -> (i32, i32, i32) {
    %c0_i32 = arith.constant 0 : i32
    %c0_i32_0 = arith.constant 0 : i32
    %c0_i32_1 = arith.constant 0 : i32
    return %arg0, %c0_i32, %c0_i32_0 : i32, i32, i32
  }
  func.func @transform_8(%arg0: i32) -> (i32, i32, i32) {
    %c0_i32 = arith.constant 0 : i32
    %c0_i32_0 = arith.constant 0 : i32
    %c0_i32_1 = arith.constant 0 : i32
    return %arg0, %c0_i32, %c0_i32_0 : i32, i32, i32
  }
  func.func @transform_9(%arg0: i32) -> (i32, i32, i32) {
    %c0_i32 = arith.constant 0 : i32
    %c0_i32_0 = arith.constant 0 : i32
    %c0_i32_1 = arith.constant 0 : i32
    return %arg0, %c0_i32, %c0_i32_0 : i32, i32, i32
  }
}

</mosaic_0001>

<bundles_post_ra>
// kernel: detection_head_forward.1
= control target key start
LH: loop header
LB: loop body
LE: loop exit
PB: predicated region body
PF: predicated region fallthrough
CT: control target
= control target key end

     0   :  { %s1215_s30 = smov 0   ;;  %s1361_s0 = inlined_call_operand.vmem [shape: bf16[2,128,128], index: 0, kind: input, shape index: {}]   ;;  %s1362_s1 = inlined_call_operand.vmem [shape: bf16[16,128], index: 1, kind: input, shape index: {}]   ;;  %s1363_s2 = inlined_call_operand.vmem [shape: bf16[128,256], index: 2, kind: input, shape index: {}]   ;;  %s1364_s3 = inlined_call_operand.vmem [shape: f32[1,256], index: 3, kind: input, shape index: {}]   ;;  %s1365_s4 = inlined_call_operand.vmem [shape: bf16[128,128], index: 4, kind: input, shape index: {}]   ;;  %s1366_s5 = inlined_call_operand.vmem [shape: f32[1,128], index: 5, kind: input, shape index: {}]   ;;  %s1367_s6 = inlined_call_operand.vmem [shape: f32[1,128], index: 6, kind: input, shape index: {}]   ;;  %s1368_s7 = inlined_call_operand.vmem [shape: f32[2,16,128], index: 7, kind: output, shape index: {0}]   ;;  %s1369_s8 = inlined_call_operand.vmem [shape: f32[2,16,128], index: 8, kind: output, shape index: {1}]   ;;  %s1370_s9 = inlined_call_operand.vmem [shape: f32[2,16,128], index: 9, kind: output, shape index: {2}]  }
   0x1 LB: > { %s945_s10 = sadd.s32 4294967295, %s1160_s30   ;;  %p949_p0 = scmp.ge.s32.totalorder %s1160_s30, 1  ;;  %s1160_s30 = sphi %s1215_s30, %s20_s30  }
   0x2   : > { %p292_p1 = scmp.lt.s32.totalorder %s1160_s30, 3 }
   0x4   : > { %p293_p2 = pnand %p949_p0, %p292_p1 }
   0x5   : > { %p338_p3 = scmp.lt.s32.totalorder (!%p293_p2), %s945_s10, 1  ;;  %v1162_v0 = vmov (!%p293_p2), 0.0   ;;  %vm1163_vm0 = vmmov (!%p293_p2), 0   ;;  %v1105_v9 = vld [vmem:[%s1362_s1] sm:$0xff] (!%p293_p2)   ;;  %v1111_v34 = vld [vmem:[%s1363_s2 + $0x14] ss:$8 sps:$4 sm:$0xff] (!%p293_p2)   ;;  %v560_v62 = vlaneseq (!%p293_p2) }
   0x6   : > { %296 = sbr.rel (%p293_p2) target bundleno = 1294 (0x50e), region = 48  ;;  %1026 = vmatprep.subr.bf16.mxu0 (!%p293_p2), %v1162_v0  ;;  %1042 = vmatprep.mubr.msk.bf16.mxu0 (!%p293_p2), %vm1163_vm0, %v1162_v0  ;;  %v958_v10 = vld [vmem:[%s1367_s6] ss:$0 sm:$0xff] (!%p293_p2)  ;;  %v1108_v25 = vld [vmem:[%s1363_s2 + $0x4] ss:$8 sps:$4 sm:$0xff] (!%p293_p2)   ;;  %v1164_v48 = vmov (!%p293_p2), 0  }
   0x7   : > { %1046 = vmatprep.subr.bf16.mxu1 (!%p293_p2), %v1162_v0  ;;  %1062 = vmatprep.mubr.msk.bf16.mxu1 (!%p293_p2), %vm1163_vm0, %v1162_v0  ;;  %v1106_v32 = vld [vmem:[%s1363_s2] ss:$8 sps:$4 sm:$0xff] (!%p293_p2)   ;;  %v1109_v35 = vld [vmem:[%s1363_s2 + $0x10] ss:$8 sps:$4 sm:$0xff] (!%p293_p2)   ;;  %v1114_v36 = vld [vmem:[%s1363_s2 + $0x24] ss:$8 sps:$4 sm:$0xff] (!%p293_p2)  }
   0x8   : > { %v1112_v37 = vld [vmem:[%s1363_s2 + $0x20] ss:$8 sps:$4 sm:$0xff] (!%p293_p2)   ;;  %v1117_v38 = vld [vmem:[%s1363_s2 + $0x34] ss:$8 sps:$4 sm:$0xff] (!%p293_p2)   ;;  %v1115_v39 = vld [vmem:[%s1363_s2 + $0x30] ss:$8 sps:$4 sm:$0xff] (!%p293_p2)  }
   0x9   : > { %v1120_v40 = vld [vmem:[%s1363_s2 + $0x44] ss:$8 sps:$4 sm:$0xff] (!%p293_p2)   ;;  %v1118_v41 = vld [vmem:[%s1363_s2 + $0x40] ss:$8 sps:$4 sm:$0xff] (!%p293_p2)   ;;  %v1123_v42 = vld [vmem:[%s1363_s2 + $0x54] ss:$8 sps:$4 sm:$0xff] (!%p293_p2)  }
   0xa   : > { %v1121_v43 = vld [vmem:[%s1363_s2 + $0x50] ss:$8 sps:$4 sm:$0xff] (!%p293_p2)   ;;  %v1126_v44 = vld [vmem:[%s1363_s2 + $0x64] ss:$8 sps:$4 sm:$0xff] (!%p293_p2)   ;;  %v1124_v45 = vld [vmem:[%s1363_s2 + $0x60] ss:$8 sps:$4 sm:$0xff] (!%p293_p2)  }
   0xb   : > { %v1129_v46 = vld [vmem:[%s1363_s2 + $0x74] ss:$8 sps:$4 sm:$0xff] (!%p293_p2)   ;;  %v1127_v47 = vld [vmem:[%s1363_s2 + $0x70] ss:$8 sps:$4 sm:$0xff] (!%p293_p2)   ;;  %v1130_v49 = vld [vmem:[%s1365_s4] sm:$0xff] (!%p293_p2)   ;;  %v561_v63 = vshrl.u32 (!%p293_p2), %v560_v62, 7 }
   0xc   : > { %v1131_v50 = vld [vmem:[%s1365_s4 + $0x8] sm:$0xff] (!%p293_p2)   ;;  %v1132_v51 = vld [vmem:[%s1365_s4 + $0x10] sm:$0xff] (!%p293_p2)   ;;  %v1133_v52 = vld [vmem:[%s1365_s4 + $0x18] sm:$0xff] (!%p293_p2)  }
   0xd   : > { %s1372_s10 = smov (!%p338_p3, %s945_s10), 1  ;;  %v1134_v53 = vld [vmem:[%s1365_s4 + $0x20] sm:$0xff]   ;;  %v1135_v54 = vld [vmem:[%s1365_s4 + $0x28] sm:$0xff]   ;;  %v1136_v60 = vld [vmem:[%s1365_s4 + $0x30] sm:$0xff]  }
   0xe   : > { %s995_s11 = sshll.u32 %s1372_s10, 6  ;;  %s1262_s21 = sshll.u32 %s1372_s10, 4  ;;  %v1137_v61 = vld [vmem:[%s1365_s4 + $0x38] sm:$0xff]  }
   0xf   : > { %s342_s14 = scalar_lea.vmem %s1361_s0, %s995_s11  ;;  %s357_s24 = scalar_lea.vmem %s1370_s9, %s1262_s21 }
  0x10   : > { %v1097_v1 = vld [vmem:[%s342_s14] sm:$0xff]   ;;  %v1098_v2 = vld [vmem:[%s342_s14 + $0x8] sm:$0xff]   ;;  %v1099_v3 = vld [vmem:[%s342_s14 + $0x10] sm:$0xff]   ;;  %s347_s17 = scalar_lea.vmem %s1368_s7, %s1262_s21  ;;  %s352_s23 = scalar_lea.vmem %s1369_s8, %s1262_s21 }
  0x11   : > { %1027 = vmatpush3.bf16.xpose.msra.mxu0 %v1097_v1  ;;  %1047 = vmatpush3.bf16.msra.mxu1 %v1097_v1  ;;  %v1100_v4 = vld [vmem:[%s342_s14 + $0x18] sm:$0xff]   ;;  %v1101_v5 = vld [vmem:[%s342_s14 + $0x20] sm:$0xff]   ;;  %v1102_v6 = vld [vmem:[%s342_s14 + $0x28] sm:$0xff]   ;;  %v562_v1 = vsub.s32 0, %v561_v63 }
  0x12   : > { %1028 = vmatprep.subr.bf16.mxu0 %v1162_v0  ;;  %1048 = vmatprep.subr.bf16.mxu1 %v1162_v0  ;;  %v1103_v7 = vld [vmem:[%s342_s14 + $0x30] sm:$0xff]   ;;  %v1104_v8 = vld [vmem:[%s342_s14 + $0x38] sm:$0xff]  }
  0x15   : > { %1049 = vmatpush3.bf16.msra.mxu1 %v1098_v2 }
  0x16   : > { %1050 = vmatprep.subr.bf16.mxu1 %v1162_v0 }
  0x19   : > { %1029 = vmatpush3.bf16.xpose.msra.mxu0 %v1098_v2  ;;  %1051 = vmatpush3.bf16.msra.mxu1 %v1099_v3  ;;  %v558_v2 = vld [vmem:[%s1364_s3] sm:$0x3] }
  0x1a   : > { %1030 = vmatprep.subr.bf16.mxu0 %v1162_v0  ;;  %1052 = vmatprep.subr.bf16.mxu1 %v1162_v0 }
  0x1d   : > { %1053 = vmatpush3.bf16.msra.mxu1 %v1100_v4 }
  0x1e   : > { %1054 = vmatprep.subr.bf16.mxu1 %v1162_v0 }
  0x21   : > { %1031 = vmatpush3.bf16.xpose.msra.mxu0 %v1099_v3  ;;  %1055 = vmatpush3.bf16.msra.mxu1 %v1101_v5  ;;  %v566_v3 = vsub.s32 1, %v561_v63 }
  0x22   : > { %1032 = vmatprep.subr.bf16.mxu0 %v1162_v0  ;;  %1056 = vmatprep.subr.bf16.mxu1 %v1162_v0 }
  0x25   : > { %1057 = vmatpush3.bf16.msra.mxu1 %v1102_v6 }
  0x26   : > { %1058 = vmatprep.subr.bf16.mxu1 %v1162_v0 }
  0x29   : > { %1033 = vmatpush3.bf16.xpose.msra.mxu0 %v1100_v4  ;;  %1059 = vmatpush3.bf16.msra.mxu1 %v1103_v7  ;;  %v563_v4 = vrot.slane %v558_v2, %v562_v1 }
  0x2a   : > { %1034 = vmatprep.subr.bf16.mxu0 %v1162_v0  ;;  %1060 = vmatprep.subr.bf16.mxu1 %v1162_v0 }
  0x2d   : > { %1061 = vmatpush3.bf16.msra.mxu1 %v1104_v8 }
  0x2e   : > { %650 = vmatprep.subr.bf16.mxu1 %v1108_v25 }
  0x31   : > { %1035 = vmatpush3.bf16.xpose.msra.mxu0 %v1101_v5  ;;  %v567_v5 = vrot.slane %v558_v2, %v566_v3 }
  0x32   : > { %1036 = vmatprep.subr.bf16.mxu0 %v1162_v0 }
  0x39   : > { %1037 = vmatpush3.bf16.xpose.msra.mxu0 %v1102_v6 }
  0x3a   : > { %1038 = vmatprep.subr.bf16.mxu0 %v1162_v0 }
  0x41   : > { %1039 = vmatpush3.bf16.xpose.msra.mxu0 %v1103_v7 }
  0x42   : > { %1040 = vmatprep.subr.bf16.mxu0 %v1162_v0 }
  0x49   : > { %1041 = vmatpush3.bf16.xpose.msra.mxu0 %v1104_v8 }
  0x4a   : > { %1066 = vmatprep.subr.bf16.mxu0 %v1162_v0 }
  0x50   : > { %1043 = vmatmul.mubr.bf16.vlgmr.msra.gmra.mrb[0].mxu0 %v1105_v9 }
  0x51   : > { %1082 = vmatprep.mubr.msk.bf16.mxu0 %vm1163_vm0, %v1162_v0  ;;  %1067 = vmatpush3.bf16.msra.mxu0 %v1130_v49 }
  0x52   : > { %1068 = vmatprep.subr.bf16.mxu0 %v1162_v0 }
  0x55   : > { %1069 = vmatpush3.bf16.msra.mxu0 %v1131_v50 }
  0x56   : > { %1070 = vmatprep.subr.bf16.mxu0 %v1162_v0 }
  0x59   : > { %1071 = vmatpush3.bf16.msra.mxu0 %v1132_v51 }
  0x5a   : > { %1072 = vmatprep.subr.bf16.mxu0 %v1162_v0 }
  0x5d   : > { %1073 = vmatpush3.bf16.msra.mxu0 %v1133_v52 }
  0x5e   : > { %1074 = vmatprep.subr.bf16.mxu0 %v1162_v0 }
  0x61   : > { %1075 = vmatpush3.bf16.msra.mxu0 %v1134_v53 }
  0x62   : > { %1076 = vmatprep.subr.bf16.mxu0 %v1162_v0 }
  0x65   : > { %1077 = vmatpush3.bf16.msra.mxu0 %v1135_v54 }
  0x66   : > { %1078 = vmatprep.subr.bf16.mxu0 %v1162_v0 }
  0x69   : > { %1079 = vmatpush3.bf16.msra.mxu0 %v1136_v60 }
  0x6a   : > { %1080 = vmatprep.subr.bf16.mxu0 %v1162_v0 }
  0x6d   : > { %1081 = vmatpush3.bf16.msra.mxu0 %v1137_v61 }
 0x123   : > { %v472_v11 = vpop.f32.mrb[0].mxu0 }
 0x124   : > { %v473_v12 = vadd.f32 %v958_v10, %v472_v11  ;;  %v1044_v13 = vpop.f32.mrb[1].mxu0 }
 0x125   : > { %v475_v14 = vpop.f32.mrb[2].mxu0 }
 0x126   : > { %479 = vmax.xlane.f32.xlu0 %v473_v12  ;;  %v1045_v15 = vpop.f32.mrb[3].mxu0  ;;  %v476_v16 = vadd.f32 %v958_v10, %v475_v14 }
 0x12a   : > { %481 = vmax.xlane.f32.xlu0 %v476_v16 }
 0x1b3   : > { %v480_v17 = vpop.xlane.xlu0 %479 }
 0x1b4   : > { %v483_v18 = vsub.f32 %v473_v12, %v480_v17 }
 0x1b6   : > { %v485_v19 = vmul.f32 1.442695, %v483_v18 }
 0x1b7   : > { %v482_v20 = vpop.xlane.xlu0 %481 }
 0x1b8   : > { %1138 = vpow2.f32 %v485_v19  ;;  %v484_v21 = vsub.f32 %v476_v16, %v482_v20  ;;  %v984_v16 = vld [vmem:[%s1366_s5] ss:$0 sm:$0xff] }
 0x1ba   : > { %v487_v22 = vmul.f32 1.442695, %v484_v21 }
 0x1bc   : > { %1140 = vpow2.f32 %v487_v22 }
 0x1c2   : > { %v1139_v23 = vpop.eup %1138 }
 0x1c3   : > { %489 = vadd.xlane.f32.xlu1 %v1139_v23 }
 0x1c6   : > { %v1141_v24 = vpop.eup %1140 }
 0x1c7   : > { %491 = vadd.xlane.f32.xlu1 %v1141_v24 }
 0x250   : > { %v490_v26 = vpop.xlane.xlu1 %489 }
 0x251   : > { %1142 = vrcp.f32 %v490_v26 }
 0x254   : > { %v492_v27 = vpop.xlane.xlu1 %491 }
 0x255   : > { %1144 = vrcp.f32 %v492_v27 }
 0x25b   : > { %v1143_v28 = vpop.eup %1142 }
 0x25c   : > { %v495_v29 = vmul.f32 %v1143_v28, %v1139_v23 }
 0x25e   : > { %497 = vst [vmem:[%s357_s24] sm:$0xff] %v495_v29 }
 0x25f   : > { %v1145_v30 = vpop.eup %1144 }
 0x260   : > { %v496_v31 = vmul.f32 %v1145_v30, %v1141_v24 }
 0x262   : > { %v499_v33 = vpack.c.bf16 %v496_v31, %v495_v29  ;;  %498 = vst [vmem:[%s357_s24 + $0x8] sm:$0xff] %v496_v31 }
 0x264   : > { %1063 = vmatmul.mubr.bf16.vlgmr.msra.gmra.mrb[0].mxu1 %v499_v33 }
 0x265   : > { %651 = vmatpush1.bf16.msra.mxu1 %v1106_v32  ;;  %682 = vmatprep.mubr.bf16.mxu1 %v1164_v48 }
 0x266   : > { %652 = vmatprep.subr.bf16.mxu1 %v1111_v34 }
 0x269   : > { %653 = vmatpush1.bf16.msra.mxu1 %v1109_v35 }
 0x26a   : > { %654 = vmatprep.subr.bf16.mxu1 %v1114_v36 }
 0x26d   : > { %655 = vmatpush1.bf16.msra.mxu1 %v1112_v37 }
 0x26e   : > { %656 = vmatprep.subr.bf16.mxu1 %v1117_v38 }
 0x271   : > { %657 = vmatpush1.bf16.msra.mxu1 %v1115_v39 }
 0x272   : > { %658 = vmatprep.subr.bf16.mxu1 %v1120_v40 }
 0x275   : > { %659 = vmatpush1.bf16.msra.mxu1 %v1118_v41 }
 0x276   : > { %660 = vmatprep.subr.bf16.mxu1 %v1123_v42 }
 0x279   : > { %661 = vmatpush1.bf16.msra.mxu1 %v1121_v43 }
 0x27a   : > { %662 = vmatprep.subr.bf16.mxu1 %v1126_v44 }
 0x27d   : > { %663 = vmatpush1.bf16.msra.mxu1 %v1124_v45 }
 0x27e   : > { %664 = vmatprep.subr.bf16.mxu1 %v1129_v46 }
 0x281   : > { %665 = vmatpush1.bf16.msra.mxu1 %v1127_v47 }
 0x337   : > { %v534_v55 = vpop.f32.mrb[0].mxu1 }
 0x338   : > { %v1064_v56 = vpop.f32.mrb[1].mxu1 }
 0x339   : > { %v537_v57 = vpop.f32.mrb[2].mxu1 }
 0x33a   : > { %v541_v58 = vpack.c.bf16 %v537_v57, %v534_v55  ;;  %v1065_v59 = vpop.f32.mrb[3].mxu1 }
 0x33c   : > { %683 = vmatmul.mubr.bf16.vlgmr.msra.gmra.mrb[4].mxu1 %v541_v58 }
 0x40f   : > { %v684_v0 = vpop.f32.mrb[4].mxu1 }
 0x410   : > { %v685_v6 = vadd.f32 %v684_v0, %v563_v4  ;;  %v686_v7 = vpop.f32.mrb[5].mxu1 }
 0x411   : > { %v687_v8 = vadd.f32 %v686_v7, %v567_v5  ;;  %v688_v9 = vpop.f32.mrb[6].mxu1 }
 0x412   : > { %820 = vst [vmem:[%s347_s17] sm:$0xff] %v685_v6  ;;  %v689_v10 = vadd.f32 %v688_v9, %v563_v4  ;;  %v690_v11 = vpop.f32.mrb[7].mxu1 }
 0x413   : > { %v691_v12 = vadd.f32 %v690_v11, %v567_v5  ;;  %v693_v13 = vmax.f32 %v687_v8, 0.0 }
 0x414   : > { %821 = vst [vmem:[%s347_s17 + $0x8] sm:$0xff] %v689_v10 }
 0x415   : > { %v694_v14 = vmax.f32 %v691_v12, 0.0 }
 0x417   : > { %v695_v15 = vpack.c.bf16 %v694_v14, %v693_v13 }
 0x419   : > { %1083 = vmatmul.mubr.bf16.vlgmr.msra.gmra.mrb[4].mxu0 %v695_v15 }
 0x4ec   : > { %v801_v17 = vpop.f32.mrb[4].mxu0 }
 0x4ed   : > { %v802_v18 = vadd.f32 %v984_v16, %v801_v17  ;;  %v1084_v19 = vpop.f32.mrb[5].mxu0 }
 0x4ee   : > { %v804_v20 = vpop.f32.mrb[6].mxu0 }
 0x4ef   : > { %v808_v21 = vsub.f32 0.0, %v802_v18  ;;  %v805_v22 = vadd.f32 %v984_v16, %v804_v20  ;;  %v1085_v23 = vpop.f32.mrb[7].mxu0 }
 0x4f1   : > { %v810_v24 = vmul.f32 1.442695, %v808_v21  ;;  %v809_v25 = vsub.f32 0.0, %v805_v22 }
 0x4f3   : > { %1146 = vpow2.f32 %v810_v24  ;;  %v812_v26 = vmul.f32 1.442695, %v809_v25 }
 0x4f5   : > { %1148 = vpow2.f32 %v812_v26 }
 0x4fd   : > { %v1147_v27 = vpop.eup %1146 }
 0x4fe   : > { %v814_v28 = vadd.f32 1.0, %v1147_v27 }
 0x4ff   : > { %v1149_v29 = vpop.eup %1148 }
 0x500   : > { %1150 = vrcp.f32 %v814_v28  ;;  %v815_v30 = vadd.f32 1.0, %v1149_v29 }
 0x502   : > { %1152 = vrcp.f32 %v815_v30 }
 0x50a   : > { %v1151_v31 = vpop.eup %1150 }
 0x50b   : > { %822 = vst [vmem:[%s352_s23] sm:$0xff] %v1151_v31 }
 0x50c   : > { %v1153_v32 = vpop.eup %1152 }
 0x50d   : > { %823 = vst [vmem:[%s352_s23 + $0x8] sm:$0xff] %v1153_v32 }
 0x50e PF: > { %s20_s30 = sadd.s32 1, %s1160_s30  }
 0x50f   : > { %p17_p4 = scmp.ge.s32.totalorder %s20_s30, 4  }
 0x511   :  { %19 = sbr.rel (!%p17_p4) target bundleno = 1 (0x1), region = 102 }

</bundles_post_ra>
